<compile_context>
chip_gen: v7x
topology: tpu7x:2x2x1
jax: 0.10.0
libtpu: 0.0.40
codegen_flags: <defaults>
</compile_context>

<pallas_src>
import functools

import jax
import jax.numpy as jnp
from jax.experimental import pallas as pl
from jax.experimental.pallas import tpu as pltpu


def _round_up(x, m):
    return ((x + m - 1) // m) * m


def _cdiv(a, b):
    return -(-a // b)


def _vmem_capacity_bytes(default=64 << 20):
    """Physical VMEM per TensorCore; conservative 64 MiB (v7x) fallback."""
    try:
        info = pltpu.get_tpu_info()
        for name in ("vmem_capacity_bytes", "vmem_size_bytes", "vmem_bytes"):
            cap = getattr(info, name, None)
            if cap:
                return int(cap)
    except Exception:
        pass
    return default


def _pnorm_parts(p_norm):
    """Returns (elementwise transform over diff, finalize over the lane-sum)."""
    if p_norm == 1:
        return (lambda d: jnp.abs(d)), (lambda s: s)
    if p_norm == 2:
        return (lambda d: d * d), jnp.sqrt
    if float(p_norm) == int(p_norm) and int(p_norm) >= 3:
        p = int(p_norm)

        def elt(d):
            a = jnp.abs(d)
            out = a
            for _ in range(p - 1):     # repeated multiplies, not pow (EUP-bound)
                out = out * a
            return out

        return elt, (lambda s: jnp.power(s, 1.0 / p))
    # Non-integer p: fall back to pow.
    return (lambda d: jnp.abs(d) ** p_norm), (lambda s: jnp.power(s, 1.0 / p_norm))


def _transe_fused_kernel(u_idx_ref, r_idx_ref, v_idx_ref, eh_ref, rvh_ref,
                         out_ref, *, p_norm):
    """Fully fused path: VMEM-resident tables, gather on the MXU via one-hots."""
    bb = u_idx_ref.shape[0]
    E = eh_ref.shape[0]
    R = rvh_ref.shape[0]
    tdt = eh_ref.dtype

    ent_ids = jax.lax.broadcasted_iota(jnp.int32, (bb, E), 1)
    rel_ids = jax.lax.broadcasted_iota(jnp.int32, (bb, R), 1)

    # Signed one-hot fuses the (u - v) entity gather into a single matmul.
    uv = ((ent_ids == u_idx_ref[...]).astype(tdt)
          - (ent_ids == v_idx_ref[...]).astype(tdt))
    rr = (rel_ids == r_idx_ref[...]).astype(rvh_ref.dtype)

    diff = (jnp.dot(uv, eh_ref[...], preferred_element_type=jnp.float32)
            + jnp.dot(rr, rvh_ref[...], preferred_element_type=jnp.float32))

    elt, fin = _pnorm_parts(p_norm)
    s = jnp.sum(elt(diff), axis=-1)                 # lane reduce -> (bb,)
    # Lane-dense store: one (1, block_b) row per grid step.
    out_ref[...] = fin(s[None, :]).astype(out_ref.dtype)


def _transe_stream_kernel(r_idx_ref, u_ref, v_ref, rvh_ref, out_ref, *, p_norm):
    """Fallback: streamed gathered entity rows, VMEM-resident relation table."""
    bb = r_idx_ref.shape[0]
    R = rvh_ref.shape[0]

    rel_ids = jax.lax.broadcasted_iota(jnp.int32, (bb, R), 1)
    rr = (rel_ids == r_idx_ref[...]).astype(rvh_ref.dtype)
    r_rows = jnp.dot(rr, rvh_ref[...], preferred_element_type=jnp.float32)

    diff = u_ref[...].astype(jnp.float32) - v_ref[...].astype(jnp.float32) + r_rows

    elt, fin = _pnorm_parts(p_norm)
    s = jnp.sum(elt(diff), axis=-1)
    out_ref[...] = fin(s[None, :]).astype(out_ref.dtype)


def transe_forward(Eh, rvh, u_idx, r_idx, v_idx, *, p_norm=2, block_b=None,
                   fuse_entity_gather=None):
    """Equivalent of transE.forward(u_idx, r_idx, v_idx).

    Note: the PyTorch module indexes `.weight` directly, so the Embedding
    max_norm=1 renormalization never fires — raw weights are used, as here.
    Out-of-range indices are not bounds-checked in-kernel; validate upstream.
    """
    B = int(u_idx.shape[0])
    E, D = int(Eh.shape[0]), int(Eh.shape[1])
    R = int(rvh.shape[0])
    itemsize = jnp.dtype(Eh.dtype).itemsize
    vmem_cap = _vmem_capacity_bytes()

    eh_bytes, rvh_bytes = E * D * itemsize, R * D * itemsize
    if fuse_entity_gather is None:
        # Keep both tables VMEM-resident (2x for pipeline buffering) when they
        # take at most ~half of VMEM, leaving room for tiles + intermediates.
        fuse_entity_gather = 2 * (eh_bytes + rvh_bytes) <= vmem_cap // 2
    # The relation table is assumed small enough to always stay resident.

    Bp128 = _round_up(max(B, 1), 128)

    if block_b is None:
        if fuse_entity_gather:
            # Streamed bytes/row are just 3 int32 indices; size the block by the
            # in-kernel intermediates (one-hots + f32 diff), ~8 MiB budget.
            per_row = (E + R + 3 * D) * 4
            block_b = (8 << 20) // per_row
            block_b = min(block_b, 2048)
        else:
            # 2 streamed (block_b, D) inputs x 2 pipeline buffers in ~60% of
            # what remains after the resident relation table.
            budget = ((vmem_cap - 2 * rvh_bytes) * 3) // 5
            per_row = 2 * 2 * D * itemsize
            block_b = budget // per_row
            block_b = min(block_b, 4096)            # HBM-roofline knee
        # Keep >= 2 blocks when possible so ("parallel",) can use both v7x TCs.
        block_b = min(block_b, max(128, _round_up(_cdiv(Bp128, 2), 128)))
        block_b = min(block_b, Bp128)               # don't overpad tiny batches
    # Round DOWN to a lane multiple (never exceed the VMEM budget), floor 128.
    block_b = max(128, (int(block_b) // 128) * 128)

    Bp = _round_up(B, block_b)
    num_blocks = Bp // block_b

    # Pad the O(B) int32 index vectors (not gathered activations) and present
    # them as (Bp, 1) columns -> sublane-major, no in-kernel relayout.
    def pad_idx(idx):
        idx = idx.astype(jnp.int32)
        pad = Bp - idx.shape[0]
        if pad:
            idx = jnp.concatenate([idx, jnp.zeros((pad,), jnp.int32)])
        return idx.reshape(Bp, 1)

    u_col, r_col, v_col = pad_idx(u_idx), pad_idx(r_idx), pad_idx(v_idx)

    idx_spec = pl.BlockSpec((block_b, 1), lambda i: (i, 0))
    out_spec = pl.BlockSpec((1, block_b), lambda i: (0, i))
    out_shape = jax.ShapeDtypeStruct((1, Bp), jnp.float32)
    n_transc = 0 if p_norm == 1 else Bp

    if fuse_entity_gather:
        kernel = functools.partial(_transe_fused_kernel, p_norm=p_norm)
        in_specs = [
            idx_spec,                                    # u indices
            idx_spec,                                    # r indices
            idx_spec,                                    # v indices
            pl.BlockSpec((E, D), lambda i: (0, 0)),      # Eh, VMEM-resident
            pl.BlockSpec((R, D), lambda i: (0, 0)),      # rvh, VMEM-resident
        ]
        args = (u_col, r_col, v_col, Eh, rvh)
        live = (2 * (eh_bytes + rvh_bytes)               # resident tables (x2 bufs)
                + 3 * 2 * block_b * 128 * 4              # lane-padded idx tiles
                + 2 * 8 * block_b * 4                    # double-buffered out tile
                + block_b * (E + R + 3 * D) * 4          # one-hots + f32 diff
                + (2 << 20))                             # Mosaic internal scratch
        flops = 2 * Bp * (E + R) * D + 3 * Bp * D
        bytes_accessed = eh_bytes + rvh_bytes + 3 * Bp * 4 + Bp * 4
    else:
        # Entity rows gathered by XLA (relation rows gathered in-kernel).
        u_rows = Eh[u_col[:, 0]]
        v_rows = Eh[v_col[:, 0]]
        kernel = functools.partial(_transe_stream_kernel, p_norm=p_norm)
        in_specs = [
            idx_spec,                                    # r indices
            pl.BlockSpec((block_b, D), lambda i: (i, 0)),  # u rows
            pl.BlockSpec((block_b, D), lambda i: (i, 0)),  # v rows
            pl.BlockSpec((R, D), lambda i: (0, 0)),      # rvh, VMEM-resident
        ]
        args = (r_col, u_rows, v_rows, rvh)
        live = (2 * 2 * block_b * D * itemsize           # u, v tiles x2 bufs
                + 2 * rvh_bytes                          # resident relation table
                + 2 * block_b * 128 * 4                  # lane-padded idx tile
                + 2 * 8 * block_b * 4                    # double-buffered out tile
                + block_b * D * 4                        # f32 diff intermediate
                + (2 << 20))                             # Mosaic internal scratch
        flops = 2 * Bp * R * D + 3 * Bp * D
        bytes_accessed = 2 * Bp * D * itemsize + rvh_bytes + 2 * Bp * 4

    upper = max(vmem_cap - (4 << 20), 32 << 20)
    vmem_limit = int(min(max(live + (8 << 20), 32 << 20), upper))

    out = pl.pallas_call(
        kernel,
        out_shape=out_shape,
        grid_spec=pl.GridSpec(
            grid=(num_blocks,),
            in_specs=in_specs,
            out_specs=out_spec,
        ),
        compiler_params=pltpu.CompilerParams(
            dimension_semantics=("parallel",),   # shard batch across TCs on v7x
            vmem_limit_bytes=vmem_limit,
        ),
        cost_estimate=pl.CostEstimate(
            flops=int(flops),
            transcendentals=int(n_transc),
            bytes_accessed=int(bytes_accessed),
        ),
    )(*args)
    return out.reshape(-1)[:B]


def xavier_uniform(key, shape):
    fan_in, fan_out = shape[1], shape[0]  # torch.nn.init.xavier_uniform_ on (rows, dim)
    bound = (6.0 / (fan_in + fan_out)) ** 0.5
    return jax.random.uniform(key, shape, dtype=jnp.float32,
                              minval=-bound, maxval=bound)


if __name__ == "__main__":
    # Synthetic "dataset" sizes consistent with the module __init__.
    num_entities = 16
    num_relations = 8
    dim = 128          # lane width -> fully utilized vregs
    batch = 8

    key = jax.random.PRNGKey(0)
    ks = jax.random.split(key, 8)

    # Deterministic parameter init (mirrors xavier_uniform_ on both tables;
    # it overwrites the padding row too, so no zeroing of row 0).
    Eh = xavier_uniform(ks[0], (num_entities, dim))
    rvh = xavier_uniform(ks[1], (num_relations, dim))

    u_idx = jax.random.randint(ks[2], (batch,), 0, num_entities, dtype=jnp.int32)
    r_idx = jax.random.randint(ks[3], (batch,), 0, num_relations, dtype=jnp.int32)
    v_idx = jax.random.randint(ks[4], (batch,), 0, num_entities, dtype=jnp.int32)

    # 1) Fully fused path (tables VMEM-resident, gather on the MXU), p=2.
    s1 = jax.block_until_ready(
        transe_forward(Eh, rvh, u_idx, r_idx, v_idx, p_norm=2))
    ref1 = jnp.linalg.norm(Eh[u_idx] + rvh[r_idx] - Eh[v_idx], ord=2, axis=-1)
    assert s1.shape == (batch,)
    assert jnp.allclose(s1, ref1, atol=1e-4, rtol=1e-4)

    # 2) Streamed fallback path (entity rows via XLA gather, rvh resident),
    #    multi-block grid + index padding + p=1 norm.
    batch2 = 300
    u2 = jax.random.randint(ks[5], (batch2,), 0, num_entities, dtype=jnp.int32)
    r2 = jax.random.randint(ks[6], (batch2,), 0, num_relations, dtype=jnp.int32)
    v2 = jax.random.randint(ks[7], (batch2,), 0, num_entities, dtype=jnp.int32)
    s2 = jax.block_until_ready(
        transe_forward(Eh, rvh, u2, r2, v2, p_norm=1,
                       block_b=128, fuse_entity_gather=False))
    ref2 = jnp.sum(jnp.abs(Eh[u2] + rvh[r2] - Eh[v2]), axis=-1)
    assert s2.shape == (batch2,)
    assert jnp.allclose(s2, ref2, atol=1e-4, rtol=1e-4)

    # 3) bf16 tables (half the HBM bytes, f32 accumulation), fused path,
    #    generic integer-p branch (p=3, repeated multiplies).
    Eh16, rvh16 = Eh.astype(jnp.bfloat16), rvh.astype(jnp.bfloat16)
    s3 = jax.block_until_ready(
        transe_forward(Eh16, rvh16, u2, r2, v2, p_norm=3))
    d3 = (Eh16[u2].astype(jnp.float32) + rvh16[r2].astype(jnp.float32)
          - Eh16[v2].astype(jnp.float32))
    ref3 = jnp.power(jnp.sum(jnp.abs(d3) ** 3, axis=-1), 1.0 / 3)
    assert s3.shape == (batch2,)
    assert jnp.allclose(s3, ref3, atol=1e-2, rtol=1e-2)

    print("KERNEL_OK")
</pallas_src>

<mosaic_0001>
module attributes {stable_mosaic.version = 11 : i64} {
  func.func @_transe_fused_kernel(%arg0: i32, %arg1: memref<128x1xi32, #tpu.memory_space<vmem>>, %arg2: memref<128x1xi32, #tpu.memory_space<vmem>>, %arg3: memref<128x1xi32, #tpu.memory_space<vmem>>, %arg4: memref<16x128xf32, #tpu.memory_space<vmem>>, %arg5: memref<8x128xf32, #tpu.memory_space<vmem>>, %arg6: memref<1x128xf32, #tpu.memory_space<vmem>>) attributes {dimension_semantics = [#tpu.dimension_semantics<parallel>], iteration_bounds = array<i64: 1>, scalar_prefetch = 0 : i64, scratch_operands = 0 : i64, tpu.core_type = #tpu.core_type<tc>, window_params = [{transform_indices = @transform_0, window_bounds = array<i64: 128, 1>}, {transform_indices = @transform_1, window_bounds = array<i64: 128, 1>}, {transform_indices = @transform_2, window_bounds = array<i64: 128, 1>}, {pipeline_mode = #tpu.pipeline_mode<synchronous>, transform_indices = @transform_3, window_bounds = array<i64: 16, 128>}, {pipeline_mode = #tpu.pipeline_mode<synchronous>, transform_indices = @transform_4, window_bounds = array<i64: 8, 128>}, {transform_indices = @transform_5, window_bounds = array<i64: 1, 128>}]} {
    %0 = tpu.iota {dimensions = array<i32: 1>} : vector<128x16xi32>
    %1 = tpu.iota {dimensions = array<i32: 1>} : vector<128x8xi32>
    %c0 = arith.constant 0 : index
    %c0_0 = arith.constant 0 : index
    %2 = vector.load %arg1[%c0, %c0_0] : memref<128x1xi32, #tpu.memory_space<vmem>>, vector<128x1xi32>
    %3 = vector.broadcast %2 : vector<128x1xi32> to vector<128x16xi32>
    %4 = arith.cmpi eq, %0, %3 : vector<128x16xi32>
    %5 = arith.extui %4 : vector<128x16xi1> to vector<128x16xi32>
    %6 = arith.sitofp %5 : vector<128x16xi32> to vector<128x16xf32>
    %c0_1 = arith.constant 0 : index
    %c0_2 = arith.constant 0 : index
    %7 = vector.load %arg3[%c0_1, %c0_2] : memref<128x1xi32, #tpu.memory_space<vmem>>, vector<128x1xi32>
    %8 = vector.broadcast %7 : vector<128x1xi32> to vector<128x16xi32>
    %9 = arith.cmpi eq, %0, %8 : vector<128x16xi32>
    %10 = arith.extui %9 : vector<128x16xi1> to vector<128x16xi32>
    %11 = arith.sitofp %10 : vector<128x16xi32> to vector<128x16xf32>
    %12 = arith.subf %6, %11 : vector<128x16xf32>
    %c0_3 = arith.constant 0 : index
    %c0_4 = arith.constant 0 : index
    %13 = vector.load %arg2[%c0_3, %c0_4] : memref<128x1xi32, #tpu.memory_space<vmem>>, vector<128x1xi32>
    %14 = vector.broadcast %13 : vector<128x1xi32> to vector<128x8xi32>
    %15 = arith.cmpi eq, %1, %14 : vector<128x8xi32>
    %16 = arith.extui %15 : vector<128x8xi1> to vector<128x8xi32>
    %17 = arith.sitofp %16 : vector<128x8xi32> to vector<128x8xf32>
    %c0_5 = arith.constant 0 : index
    %c0_6 = arith.constant 0 : index
    %18 = vector.load %arg4[%c0_5, %c0_6] : memref<16x128xf32, #tpu.memory_space<vmem>>, vector<16x128xf32>
    %cst = arith.constant dense<0.000000e+00> : vector<128x128xf32>
    %19 = tpu.matmul %12, %18, %cst {dimension_numbers = #tpu.dot_dimension_numbers<[1], [0], [0], [1], [0, 0, 1, 1], [], []>} : vector<128x16xf32>, vector<16x128xf32>, vector<128x128xf32> -> vector<128x128xf32>
    %c0_7 = arith.constant 0 : index
    %c0_8 = arith.constant 0 : index
    %20 = vector.load %arg5[%c0_7, %c0_8] : memref<8x128xf32, #tpu.memory_space<vmem>>, vector<8x128xf32>
    %cst_9 = arith.constant dense<0.000000e+00> : vector<128x128xf32>
    %21 = tpu.matmul %17, %20, %cst_9 {dimension_numbers = #tpu.dot_dimension_numbers<[1], [0], [0], [1], [0, 0, 1, 1], [], []>} : vector<128x8xf32>, vector<8x128xf32>, vector<128x128xf32> -> vector<128x128xf32>
    %22 = arith.addf %19, %21 : vector<128x128xf32>
    %23 = arith.mulf %22, %22 : vector<128x128xf32>
    %cst_10 = arith.constant dense<0.000000e+00> : vector<128xf32>
    %24 = vector.multi_reduction <add>, %23, %cst_10 [1] : vector<128x128xf32> to vector<128xf32>
    %25 = vector.shape_cast %24 : vector<128xf32> to vector<1x128xf32>
    %26 = math.sqrt %25 : vector<1x128xf32>
    %c0_11 = arith.constant 0 : index
    %c0_12 = arith.constant 0 : index
    %27 = vector.load %arg6[%c0_11, %c0_12] : memref<1x128xf32, #tpu.memory_space<vmem>>, vector<1x128xf32>
    tpu.vector_store %arg6[%c0_11, %c0_12], %26 {strides = array<i32>} : memref<1x128xf32, #tpu.memory_space<vmem>>, vector<1x128xf32>,
    return
  }
  func.func @transform_0(%arg0: i32) -> (i32, i32) {
    %c0_i32 = arith.constant 0 : i32
    %c0_i32_0 = arith.constant 0 : i32
    return %arg0, %c0_i32 : i32, i32
  }
  func.func @transform_1(%arg0: i32) -> (i32, i32) {
    %c0_i32 = arith.constant 0 : i32
    %c0_i32_0 = arith.constant 0 : i32
    return %arg0, %c0_i32 : i32, i32
  }
  func.func @transform_2(%arg0: i32) -> (i32, i32) {
    %c0_i32 = arith.constant 0 : i32
    %c0_i32_0 = arith.constant 0 : i32
    return %arg0, %c0_i32 : i32, i32
  }
  func.func @transform_3(%arg0: i32) -> (i32, i32) {
    %c0_i32 = arith.constant 0 : i32
    %c0_i32_0 = arith.constant 0 : i32
    %c0_i32_1 = arith.constant 0 : i32
    return %c0_i32, %c0_i32_0 : i32, i32
  }
  func.func @transform_4(%arg0: i32) -> (i32, i32) {
    %c0_i32 = arith.constant 0 : i32
    %c0_i32_0 = arith.constant 0 : i32
    %c0_i32_1 = arith.constant 0 : i32
    return %c0_i32, %c0_i32_0 : i32, i32
  }
  func.func @transform_5(%arg0: i32) -> (i32, i32) {
    %c0_i32 = arith.constant 0 : i32
    %c0_i32_0 = arith.constant 0 : i32
    return %c0_i32, %arg0 : i32, i32
  }
}

</mosaic_0001>

<bundles_post_ra>
// kernel: tpu_custom_call.1
= control target key start
LH: loop header
LB: loop body
LE: loop exit
PB: predicated region body
PF: predicated region fallthrough
CT: control target
= control target key end

     0   :  { %v1317_v2 = vmov 0   ;;  %s1848_s0 = inlined_call_operand.vmem [shape: s32[128,1], index: 0, kind: input, shape index: {}]   ;;  %s1849_s1 = inlined_call_operand.vmem [shape: s32[128,1], index: 1, kind: input, shape index: {}]   ;;  %s1850_s2 = inlined_call_operand.vmem [shape: s32[128,1], index: 2, kind: input, shape index: {}]   ;;  %s1851_s3 = inlined_call_operand.vmem [shape: f32[16,128], index: 3, kind: input, shape index: {}]   ;;  %s1852_s4 = inlined_call_operand.vmem [shape: f32[8,128], index: 4, kind: input, shape index: {}]   ;;  %s1853_s5 = inlined_call_operand.hbm [shape: f32[1,128], index: 5, kind: output, shape index: {}]  }
   0x1   :  { %v24_v0 = vld [vmem:[%s1848_s0 + $0x8] sm:$0xff]  ;;  %v23_v1 = vld [vmem:[%s1848_s0] sm:$0xff]  ;;  %1260 = vset.pattern.permute.xlu1 %v1317_v2  ;;  %1259 = vset.pattern.permute.xlu0 %v1317_v2  ;;  %v137_v7 = vld [vmem:[%s1850_s2 + $0x10] sm:$0xff] }
   0x2   :  { %43 = vperm.xlu1 %1260, %v24_v0   ;;  %40 = vperm.xlu0 %1259, %v23_v1   ;;  %v136_v3 = vld [vmem:[%s1850_s2 + $0x8] sm:$0xff]  ;;  %v135_v4 = vld [vmem:[%s1850_s2] sm:$0xff]  ;;  %v25_v8 = vld [vmem:[%s1848_s0 + $0x10] sm:$0xff] }
   0x3   :  { %v264_v5 = vld [vmem:[%s1849_s1 + $0x8] sm:$0xff]  ;;  %v263_v6 = vld [vmem:[%s1849_s1] sm:$0xff]  ;;  %v138_v9 = vld [vmem:[%s1850_s2 + $0x18] sm:$0xff] }
   0x4   :  { %v26_v10 = vld [vmem:[%s1848_s0 + $0x18] sm:$0xff]  ;;  %v375_v11 = vld [vmem:[%s1851_s3] sm:$0xff]  ;;  %v376_v12 = vld [vmem:[%s1851_s3 + $0x8] sm:$0xff] }
   0x5   :  { %v377_v13 = vld [vmem:[%s1852_s4] sm:$0xff]  ;;  %v1236_v14 = vpack.c.bf16 %v376_v12, %v375_v11 }
   0x6   :  { %155 = vperm.xlu1 %1260, %v136_v3   ;;  %152 = vperm.xlu0 %1259, %v135_v4  }
   0x7   :  { %1182 = vmatprep.subr.mxu1 %v377_v13 }
   0xa   :  { %283 = vperm.xlu1 %1260, %v264_v5   ;;  %280 = vperm.xlu0 %1259, %v263_v6  }
   0xe   :  { %158 = vperm.xlu1 %1260, %v137_v7   ;;  %46 = vperm.xlu0 %1259, %v25_v8  }
   0xf   :  { %10 = vsyncpa [#allocation3], 0  ;;  %v266_v15 = vld [vmem:[%s1849_s1 + $0x18] sm:$0xff]  ;;  %v265_v16 = vld [vmem:[%s1849_s1 + $0x10] sm:$0xff]  ;;  %1237 = vmatprep.subr.bf16.mxu0 %v1236_v14  ;;  %1183 = vmatpush3.msra.mxu1 %v377_v13  ;;  %v21_v53 = vlaneseq  ;;  %vm572_vm4 = vcmask 130048   ;;  %v1318_v59 = vmov 0.0  }
  0x10   :  { %1239 = vmatpush3.bf16.msra.mxu0 %v1236_v14  ;;  %v139_v17 = vld [vmem:[%s1850_s2 + $0x20] sm:$0xff]  ;;  %v140_v19 = vld [vmem:[%s1850_s2 + $0x28] sm:$0xff]  ;;  %v141_v23 = vld [vmem:[%s1850_s2 + $0x30] sm:$0xff]  ;;  %vm378_vm5 = vcmask 64512  }
  0x11   :  { %v27_v18 = vld [vmem:[%s1848_s0 + $0x20] sm:$0xff]  ;;  %v28_v20 = vld [vmem:[%s1848_s0 + $0x28] sm:$0xff]  ;;  %v29_v24 = vld [vmem:[%s1848_s0 + $0x30] sm:$0xff]  ;;  %v1504_v54 = vand.u32 127, %v21_v53 }
  0x12   :  { %161 = vperm.xlu1 %1260, %v138_v9   ;;  %49 = vperm.xlu0 %1259, %v26_v10   ;;  %v268_v21 = vld [vmem:[%s1849_s1 + $0x28] sm:$0xff]  ;;  %v267_v22 = vld [vmem:[%s1849_s1 + $0x20] sm:$0xff]  ;;  %v142_v25 = vld [vmem:[%s1850_s2 + $0x38] sm:$0xff] }
  0x13   :  { %v30_v26 = vld [vmem:[%s1848_s0 + $0x38] sm:$0xff]  ;;  %v269_v28 = vld [vmem:[%s1849_s1 + $0x30] sm:$0xff]  ;;  %v143_v29 = vld [vmem:[%s1850_s2 + $0x40] sm:$0xff] }
  0x14   :  { %v270_v27 = vld [vmem:[%s1849_s1 + $0x38] sm:$0xff]  ;;  %v31_v30 = vld [vmem:[%s1848_s0 + $0x40] sm:$0xff]  ;;  %v144_v31 = vld [vmem:[%s1850_s2 + $0x48] sm:$0xff] }
  0x15   :  { %v32_v32 = vld [vmem:[%s1848_s0 + $0x48] sm:$0xff]  ;;  %v271_v34 = vld [vmem:[%s1849_s1 + $0x40] sm:$0xff]  ;;  %v145_v35 = vld [vmem:[%s1850_s2 + $0x50] sm:$0xff] }
  0x16   :  { %289 = vperm.xlu1 %1260, %v266_v15   ;;  %286 = vperm.xlu0 %1259, %v265_v16   ;;  %v272_v33 = vld [vmem:[%s1849_s1 + $0x48] sm:$0xff]  ;;  %v33_v36 = vld [vmem:[%s1848_s0 + $0x50] sm:$0xff]  ;;  %v146_v37 = vld [vmem:[%s1850_s2 + $0x58] sm:$0xff] }
  0x17   :  { %v34_v38 = vld [vmem:[%s1848_s0 + $0x58] sm:$0xff]  ;;  %v273_v40 = vld [vmem:[%s1849_s1 + $0x50] sm:$0xff]  ;;  %v147_v41 = vld [vmem:[%s1850_s2 + $0x60] sm:$0xff] }
  0x18   :  { %v274_v39 = vld [vmem:[%s1849_s1 + $0x58] sm:$0xff]  ;;  %v35_v42 = vld [vmem:[%s1848_s0 + $0x60] sm:$0xff]  ;;  %v148_v43 = vld [vmem:[%s1850_s2 + $0x68] sm:$0xff] }
  0x19   :  { %v36_v44 = vld [vmem:[%s1848_s0 + $0x68] sm:$0xff]  ;;  %v275_v46 = vld [vmem:[%s1849_s1 + $0x60] sm:$0xff]  ;;  %v149_v47 = vld [vmem:[%s1850_s2 + $0x70] sm:$0xff] }
  0x1a   :  { %164 = vperm.xlu1 %1260, %v139_v17   ;;  %52 = vperm.xlu0 %1259, %v27_v18   ;;  %v276_v45 = vld [vmem:[%s1849_s1 + $0x68] sm:$0xff]  ;;  %v37_v48 = vld [vmem:[%s1848_s0 + $0x70] sm:$0xff]  ;;  %v150_v49 = vld [vmem:[%s1850_s2 + $0x78] sm:$0xff] }
  0x1b   :  { %v38_v50 = vld [vmem:[%s1848_s0 + $0x78] sm:$0xff]  ;;  %v277_v52 = vld [vmem:[%s1849_s1 + $0x70] sm:$0xff]  ;;  %s1319_s0 = smov [#allocation2]  }
  0x1c   :  { %v278_v51 = vld [vmem:[%s1849_s1 + $0x78] sm:$0xff]  ;;  %s1059_s1 = sshll.u32 %s1319_s0, 4  ;;  %s1060_s1 = int_to_ptr.vmem [resolvable:$true] %s1059_s1 }
  0x1d   :  { %s1293_s2 = scalar_lea.vmem %s1060_s1, 16  ;;  %s1297_s14 = scalar_lea.vmem %s1060_s1, 32 }
  0x1e   :  { %167 = vperm.xlu1 %1260, %v140_v19   ;;  %55 = vperm.xlu0 %1259, %v28_v20   ;;  %p1294_p0 = scmp.ne.s32.totalorder %s1060_s1, %s1293_s2  ;;  %p1298_p1 = scmp.lt.s32.totalorder %s1060_s1, %s1060_s1 }
  0x1f   :  { %p1299_p2 = scmp.lt.s32.totalorder %s1297_s14, %s1293_s2 }
  0x21   :  { %p1300_p3 = por %p1299_p2, %p1298_p1 }
  0x22   :  { %295 = vperm.xlu1 %1260, %v268_v21   ;;  %292 = vperm.xlu0 %1259, %v267_v22  }
  0x23   :  { %p1301_p4 = pnand %p1300_p3, %p1294_p0 }
  0x26   :  { %170 = vperm.xlu1 %1260, %v141_v23   ;;  %58 = vperm.xlu0 %1259, %v29_v24  }
  0x2a   :  { %173 = vperm.xlu1 %1260, %v142_v25   ;;  %61 = vperm.xlu0 %1259, %v30_v26  }
  0x2e   :  { %301 = vperm.xlu1 %1260, %v270_v27   ;;  %298 = vperm.xlu0 %1259, %v269_v28  }
  0x32   :  { %176 = vperm.xlu1 %1260, %v143_v29   ;;  %64 = vperm.xlu0 %1259, %v31_v30  }
  0x36   :  { %179 = vperm.xlu1 %1260, %v144_v31   ;;  %67 = vperm.xlu0 %1259, %v32_v32  }
  0x3a   :  { %307 = vperm.xlu1 %1260, %v272_v33   ;;  %304 = vperm.xlu0 %1259, %v271_v34  }
  0x3e   :  { %182 = vperm.xlu1 %1260, %v145_v35   ;;  %70 = vperm.xlu0 %1259, %v33_v36  }
  0x42   :  { %185 = vperm.xlu1 %1260, %v146_v37   ;;  %73 = vperm.xlu0 %1259, %v34_v38  }
  0x46   :  { %313 = vperm.xlu1 %1260, %v274_v39   ;;  %310 = vperm.xlu0 %1259, %v273_v40  }
  0x4a   :  { %188 = vperm.xlu1 %1260, %v147_v41   ;;  %76 = vperm.xlu0 %1259, %v35_v42  }
  0x4e   :  { %191 = vperm.xlu1 %1260, %v148_v43   ;;  %79 = vperm.xlu0 %1259, %v36_v44  }
  0x52   :  { %319 = vperm.xlu1 %1260, %v276_v45   ;;  %316 = vperm.xlu0 %1259, %v275_v46  }
  0x56   :  { %194 = vperm.xlu1 %1260, %v149_v47   ;;  %82 = vperm.xlu0 %1259, %v37_v48  }
  0x5a   :  { %197 = vperm.xlu1 %1260, %v150_v49   ;;  %85 = vperm.xlu0 %1259, %v38_v50  }
  0x5e   :  { %325 = vperm.xlu1 %1260, %v278_v51   ;;  %322 = vperm.xlu0 %1259, %v277_v52  }
  0x81   :  { %v44_v55 = vpop.permute.xlu1 %43  ;;  %v41_v56 = vpop.permute.xlu0 %40 }
  0x82   :  { %vm88_vm0 = vcmp.eq.s32.totalorder %v1504_v54, %v44_v55  ;;  %vm87_vm1 = vcmp.eq.s32.totalorder %v1504_v54, %v41_v56 }
  0x83   :  { %v1068_v60 = vsel %vm88_vm0, 1.0, %v1318_v59  ;;  %v1067_v61 = vsel %vm87_vm1, 1.0, %v1318_v59 }
  0x85   :  { %v156_v57 = vpop.permute.xlu1 %155  ;;  %v153_v58 = vpop.permute.xlu0 %152 }
  0x86   :  { %vm200_vm2 = vcmp.eq.s32.totalorder %v1504_v54, %v156_v57  ;;  %vm199_vm3 = vcmp.eq.s32.totalorder %v1504_v54, %v153_v58 }
  0x87   :  { %v1084_v62 = vsel %vm200_vm2, 1.0, %v1318_v59  ;;  %v1083_v63 = vsel %vm199_vm3, 1.0, %v1318_v59 }
  0x88   :  { %v248_v0 = vsub.f32 %v1068_v60, %v1084_v62  ;;  %v247_v1 = vsub.f32 %v1067_v61, %v1083_v63 }
  0x89   :  { %v284_v2 = vpop.permute.xlu1 %283  ;;  %v281_v3 = vpop.permute.xlu0 %280 }
  0x8a   :  { %vm328_vm6 = vcmp.eq.s32.totalorder %v1504_v54, %v284_v2  ;;  %vm327_vm7 = vcmp.eq.s32.totalorder %v1504_v54, %v281_v3  ;;  %1212 = vmatprep.mubr.msk.f32.mxu0 %vm572_vm4, %v247_v1 }
  0x8b   :  { %v1100_v4 = vsel %vm328_vm6, 1.0, %v1318_v59  ;;  %1213 = vmatmul.mubr.msk.f32.vlgmr.msra.gmra.mrb[0].mxu0 %vm572_vm4, %v248_v0  ;;  %v1099_v5 = vsel %vm327_vm7, 1.0, %v1318_v59 }
  0x8c   :  { %1184 = vmatprep.mubr.msk.f32.mxu1 %vm378_vm5, %v1099_v5 }
  0x8d   :  { %v159_v6 = vpop.permute.xlu1 %158  ;;  %v47_v7 = vpop.permute.xlu0 %46  ;;  %1185 = vmatmul.mubr.msk.f32.vlgmr.msra.gmra.mrb[0].mxu1 %vm378_vm5, %v1100_v4 }
  0x8e   :  { %vm201_vm8 = vcmp.eq.s32.totalorder %v1504_v54, %v159_v6  ;;  %vm89_vm9 = vcmp.eq.s32.totalorder %v1504_v54, %v47_v7 }
  0x8f   :  { %v1085_v8 = vsel %vm201_vm8, 1.0, %v1318_v59  ;;  %v1069_v9 = vsel %vm89_vm9, 1.0, %v1318_v59 }
  0x90   :  { %v249_v10 = vsub.f32 %v1069_v9, %v1085_v8 }
  0x91   :  { %v162_v11 = vpop.permute.xlu1 %161  ;;  %v50_v12 = vpop.permute.xlu0 %49 }
  0x92   :  { %vm202_vm10 = vcmp.eq.s32.totalorder %v1504_v54, %v162_v11  ;;  %vm90_vm11 = vcmp.eq.s32.totalorder %v1504_v54, %v50_v12  ;;  %1215 = vmatprep.mubr.msk.f32.mxu0 %vm572_vm4, %v249_v10 }
  0x93   :  { %v1086_v13 = vsel %vm202_vm10, 1.0, %v1318_v59  ;;  %v1070_v14 = vsel %vm90_vm11, 1.0, %v1318_v59 }
  0x94   :  { %v250_v15 = vsub.f32 %v1070_v14, %v1086_v13 }
  0x95   :  { %v290_v16 = vpop.permute.xlu1 %289  ;;  %v287_v17 = vpop.permute.xlu0 %286 }
  0x96   :  { %vm330_vm12 = vcmp.eq.s32.totalorder %v1504_v54, %v290_v16  ;;  %vm329_vm13 = vcmp.eq.s32.totalorder %v1504_v54, %v287_v17  ;;  %1216 = vmatmul.mubr.msk.f32.gmra.mrb[2].mxu0 %vm572_vm4, %v250_v15 }
  0x97   :  { %v1102_v18 = vsel %vm330_vm12, 1.0, %v1318_v59  ;;  %v1101_v19 = vsel %vm329_vm13, 1.0, %v1318_v59 }
  0x98   :  { %1187 = vmatprep.mubr.msk.f32.mxu1 %vm378_vm5, %v1101_v19 }
  0x99   :  { %v165_v20 = vpop.permute.xlu1 %164  ;;  %v53_v21 = vpop.permute.xlu0 %52  ;;  %1188 = vmatmul.mubr.msk.f32.gmra.mrb[2].mxu1 %vm378_vm5, %v1102_v18 }
  0x9a   :  { %vm203_vm14 = vcmp.eq.s32.totalorder %v1504_v54, %v165_v20  ;;  %vm91_vm15 = vcmp.eq.s32.totalorder %v1504_v54, %v53_v21 }
  0x9b   :  { %v1087_v22 = vsel %vm203_vm14, 1.0, %v1318_v59  ;;  %v1071_v23 = vsel %vm91_vm15, 1.0, %v1318_v59 }
  0x9c   :  { %v251_v24 = vsub.f32 %v1071_v23, %v1087_v22 }
  0x9d   :  { %v168_v25 = vpop.permute.xlu1 %167  ;;  %v56_v26 = vpop.permute.xlu0 %55 }
  0x9e   :  { %vm204_vm0 = vcmp.eq.s32.totalorder %v1504_v54, %v168_v25  ;;  %vm92_vm1 = vcmp.eq.s32.totalorder %v1504_v54, %v56_v26  ;;  %1218 = vmatprep.mubr.msk.f32.mxu0 %vm572_vm4, %v251_v24 }
  0x9f   :  { %v1088_v27 = vsel %vm204_vm0, 1.0, %v1318_v59  ;;  %v1072_v28 = vsel %vm92_vm1, 1.0, %v1318_v59 }
  0xa0   :  { %v252_v29 = vsub.f32 %v1072_v28, %v1088_v27 }
  0xa1   :  { %v296_v30 = vpop.permute.xlu1 %295  ;;  %v293_v31 = vpop.permute.xlu0 %292 }
  0xa2   :  { %vm332_vm2 = vcmp.eq.s32.totalorder %v1504_v54, %v296_v30  ;;  %vm331_vm3 = vcmp.eq.s32.totalorder %v1504_v54, %v293_v31  ;;  %1219 = vmatmul.mubr.msk.f32.gmra.mrb[4].mxu0 %vm572_vm4, %v252_v29 }
  0xa3   :  { %v1104_v32 = vsel %vm332_vm2, 1.0, %v1318_v59  ;;  %v1103_v33 = vsel %vm331_vm3, 1.0, %v1318_v59 }
  0xa4   :  { %1190 = vmatprep.mubr.msk.f32.mxu1 %vm378_vm5, %v1103_v33 }
  0xa5   :  { %v171_v34 = vpop.permute.xlu1 %170  ;;  %v59_v35 = vpop.permute.xlu0 %58  ;;  %1191 = vmatmul.mubr.msk.f32.gmra.mrb[4].mxu1 %vm378_vm5, %v1104_v32 }
  0xa6   :  { %vm205_vm6 = vcmp.eq.s32.totalorder %v1504_v54, %v171_v34  ;;  %vm93_vm7 = vcmp.eq.s32.totalorder %v1504_v54, %v59_v35 }
  0xa7   :  { %v1089_v36 = vsel %vm205_vm6, 1.0, %v1318_v59  ;;  %v1073_v37 = vsel %vm93_vm7, 1.0, %v1318_v59 }
  0xa8   :  { %v253_v38 = vsub.f32 %v1073_v37, %v1089_v36 }
  0xa9   :  { %v174_v39 = vpop.permute.xlu1 %173  ;;  %v62_v40 = vpop.permute.xlu0 %61 }
  0xaa   :  { %vm206_vm8 = vcmp.eq.s32.totalorder %v1504_v54, %v174_v39  ;;  %vm94_vm9 = vcmp.eq.s32.totalorder %v1504_v54, %v62_v40  ;;  %1221 = vmatprep.mubr.msk.f32.mxu0 %vm572_vm4, %v253_v38 }
  0xab   :  { %v1090_v41 = vsel %vm206_vm8, 1.0, %v1318_v59  ;;  %v1074_v42 = vsel %vm94_vm9, 1.0, %v1318_v59 }
  0xac   :  { %v254_v43 = vsub.f32 %v1074_v42, %v1090_v41 }
  0xad   :  { %v302_v44 = vpop.permute.xlu1 %301  ;;  %v299_v45 = vpop.permute.xlu0 %298 }
  0xae   :  { %vm334_vm10 = vcmp.eq.s32.totalorder %v1504_v54, %v302_v44  ;;  %vm333_vm11 = vcmp.eq.s32.totalorder %v1504_v54, %v299_v45  ;;  %1222 = vmatmul.mubr.msk.f32.gmra.mrb[6].mxu0 %vm572_vm4, %v254_v43 }
  0xaf   :  { %v1106_v46 = vsel %vm334_vm10, 1.0, %v1318_v59  ;;  %v1105_v47 = vsel %vm333_vm11, 1.0, %v1318_v59 }
  0xb0   :  { %1193 = vmatprep.mubr.msk.f32.mxu1 %vm378_vm5, %v1105_v47 }
  0xb1   :  { %v177_v48 = vpop.permute.xlu1 %176  ;;  %v65_v49 = vpop.permute.xlu0 %64  ;;  %1194 = vmatmul.mubr.msk.f32.gmra.mrb[6].mxu1 %vm378_vm5, %v1106_v46 }
  0xb2   :  { %vm207_vm12 = vcmp.eq.s32.totalorder %v1504_v54, %v177_v48  ;;  %vm95_vm13 = vcmp.eq.s32.totalorder %v1504_v54, %v65_v49 }
  0xb3   :  { %v1091_v50 = vsel %vm207_vm12, 1.0, %v1318_v59  ;;  %v1075_v51 = vsel %vm95_vm13, 1.0, %v1318_v59 }
  0xb4   :  { %v255_v52 = vsub.f32 %v1075_v51, %v1091_v50 }
  0xb5   :  { %v180_v55 = vpop.permute.xlu1 %179  ;;  %v68_v56 = vpop.permute.xlu0 %67 }
  0xb6   :  { %vm208_vm14 = vcmp.eq.s32.totalorder %v1504_v54, %v180_v55  ;;  %vm96_vm15 = vcmp.eq.s32.totalorder %v1504_v54, %v68_v56  ;;  %1224 = vmatprep.mubr.msk.f32.mxu0 %vm572_vm4, %v255_v52 }
  0xb7   :  { %v1092_v57 = vsel %vm208_vm14, 1.0, %v1318_v59  ;;  %v1076_v58 = vsel %vm96_vm15, 1.0, %v1318_v59 }
  0xb8   :  { %v256_v60 = vsub.f32 %v1076_v58, %v1092_v57 }
  0xb9   :  { %v308_v61 = vpop.permute.xlu1 %307  ;;  %v305_v62 = vpop.permute.xlu0 %304 }
  0xba   :  { %vm336_vm0 = vcmp.eq.s32.totalorder %v1504_v54, %v308_v61  ;;  %vm335_vm1 = vcmp.eq.s32.totalorder %v1504_v54, %v305_v62  ;;  %1225 = vmatmul.mubr.msk.f32.gmra.mrb[8].mxu0 %vm572_vm4, %v256_v60 }
  0xbb   :  { %v1108_v63 = vsel %vm336_vm0, 1.0, %v1318_v59  ;;  %v1107_v0 = vsel %vm335_vm1, 1.0, %v1318_v59 }
  0xbc   :  { %1196 = vmatprep.mubr.msk.f32.mxu1 %vm378_vm5, %v1107_v0 }
  0xbd   :  { %v183_v1 = vpop.permute.xlu1 %182  ;;  %v71_v2 = vpop.permute.xlu0 %70  ;;  %1197 = vmatmul.mubr.msk.f32.gmra.mrb[8].mxu1 %vm378_vm5, %v1108_v63 }
  0xbe   :  { %vm209_vm2 = vcmp.eq.s32.totalorder %v1504_v54, %v183_v1  ;;  %vm97_vm3 = vcmp.eq.s32.totalorder %v1504_v54, %v71_v2 }
  0xbf   :  { %v1093_v3 = vsel %vm209_vm2, 1.0, %v1318_v59  ;;  %v1077_v4 = vsel %vm97_vm3, 1.0, %v1318_v59 }
  0xc0   :  { %v257_v5 = vsub.f32 %v1077_v4, %v1093_v3 }
  0xc1   :  { %v186_v6 = vpop.permute.xlu1 %185  ;;  %v74_v7 = vpop.permute.xlu0 %73 }
  0xc2   :  { %vm210_vm6 = vcmp.eq.s32.totalorder %v1504_v54, %v186_v6  ;;  %vm98_vm7 = vcmp.eq.s32.totalorder %v1504_v54, %v74_v7  ;;  %1227 = vmatprep.mubr.msk.f32.mxu0 %vm572_vm4, %v257_v5 }
  0xc3   :  { %v1094_v8 = vsel %vm210_vm6, 1.0, %v1318_v59  ;;  %v1078_v9 = vsel %vm98_vm7, 1.0, %v1318_v59 }
  0xc4   :  { %v258_v10 = vsub.f32 %v1078_v9, %v1094_v8 }
  0xc5   :  { %v314_v11 = vpop.permute.xlu1 %313  ;;  %v311_v12 = vpop.permute.xlu0 %310 }
  0xc6   :  { %vm338_vm8 = vcmp.eq.s32.totalorder %v1504_v54, %v314_v11  ;;  %vm337_vm9 = vcmp.eq.s32.totalorder %v1504_v54, %v311_v12  ;;  %1228 = vmatmul.mubr.msk.f32.gmra.mrb[10].mxu0 %vm572_vm4, %v258_v10 }
  0xc7   :  { %v1110_v13 = vsel %vm338_vm8, 1.0, %v1318_v59  ;;  %v1109_v14 = vsel %vm337_vm9, 1.0, %v1318_v59 }
  0xc8   :  { %1199 = vmatprep.mubr.msk.f32.mxu1 %vm378_vm5, %v1109_v14 }
  0xc9   :  { %v189_v15 = vpop.permute.xlu1 %188  ;;  %v77_v16 = vpop.permute.xlu0 %76  ;;  %1200 = vmatmul.mubr.msk.f32.gmra.mrb[10].mxu1 %vm378_vm5, %v1110_v13 }
  0xca   :  { %vm211_vm10 = vcmp.eq.s32.totalorder %v1504_v54, %v189_v15  ;;  %vm99_vm11 = vcmp.eq.s32.totalorder %v1504_v54, %v77_v16 }
  0xcb   :  { %v1095_v17 = vsel %vm211_vm10, 1.0, %v1318_v59  ;;  %v1079_v18 = vsel %vm99_vm11, 1.0, %v1318_v59  ;;  %vm958_vm10 = vcmask 195712  }
  0xcc   :  { %v259_v19 = vsub.f32 %v1079_v18, %v1095_v17 }
  0xcd   :  { %v192_v20 = vpop.permute.xlu1 %191  ;;  %v80_v21 = vpop.permute.xlu0 %79 }
  0xce   :  { %vm212_vm12 = vcmp.eq.s32.totalorder %v1504_v54, %v192_v20  ;;  %vm100_vm13 = vcmp.eq.s32.totalorder %v1504_v54, %v80_v21  ;;  %1230 = vmatprep.mubr.msk.f32.mxu0 %vm572_vm4, %v259_v19 }
  0xcf   :  { %v1096_v22 = vsel %vm212_vm12, 1.0, %v1318_v59  ;;  %v1080_v23 = vsel %vm100_vm13, 1.0, %v1318_v59 }
  0xd0   :  { %v260_v24 = vsub.f32 %v1080_v23, %v1096_v22 }
  0xd1   :  { %v320_v25 = vpop.permute.xlu1 %319  ;;  %v317_v26 = vpop.permute.xlu0 %316 }
  0xd2   :  { %vm340_vm14 = vcmp.eq.s32.totalorder %v1504_v54, %v320_v25  ;;  %vm339_vm15 = vcmp.eq.s32.totalorder %v1504_v54, %v317_v26  ;;  %1231 = vmatmul.mubr.msk.f32.gmra.mrb[12].mxu0 %vm572_vm4, %v260_v24 }
  0xd3   :  { %v1112_v27 = vsel %vm340_vm14, 1.0, %v1318_v59  ;;  %v1111_v28 = vsel %vm339_vm15, 1.0, %v1318_v59  ;;  %vm965_vm14 = vcmask 261312  }
  0xd4   :  { %1202 = vmatprep.mubr.msk.f32.mxu1 %vm378_vm5, %v1111_v28 }
  0xd5   :  { %v195_v29 = vpop.permute.xlu1 %194  ;;  %v83_v30 = vpop.permute.xlu0 %82  ;;  %1203 = vmatmul.mubr.msk.f32.gmra.mrb[12].mxu1 %vm378_vm5, %v1112_v27 }
  0xd6   :  { %vm213_vm0 = vcmp.eq.s32.totalorder %v1504_v54, %v195_v29  ;;  %vm101_vm1 = vcmp.eq.s32.totalorder %v1504_v54, %v83_v30 }
  0xd7   :  { %v1097_v31 = vsel %vm213_vm0, 1.0, %v1318_v59  ;;  %v1081_v32 = vsel %vm101_vm1, 1.0, %v1318_v59  ;;  %vm972_vm0 = vcmask 326912  }
  0xd8   :  { %v261_v33 = vsub.f32 %v1081_v32, %v1097_v31 }
  0xd9   :  { %v198_v34 = vpop.permute.xlu1 %197  ;;  %v86_v35 = vpop.permute.xlu0 %85 }
  0xda   :  { %vm214_vm2 = vcmp.eq.s32.totalorder %v1504_v54, %v198_v34  ;;  %vm102_vm3 = vcmp.eq.s32.totalorder %v1504_v54, %v86_v35  ;;  %1233 = vmatprep.mubr.msk.f32.mxu0 %vm572_vm4, %v261_v33 }
  0xdb   :  { %v1098_v36 = vsel %vm214_vm2, 1.0, %v1318_v59  ;;  %v1082_v37 = vsel %vm102_vm3, 1.0, %v1318_v59  ;;  %vm979_vm3 = vcmask 392512  }
  0xdc   :  { %v262_v38 = vsub.f32 %v1082_v37, %v1098_v36 }
  0xdd   :  { %v326_v39 = vpop.permute.xlu1 %325  ;;  %v323_v40 = vpop.permute.xlu0 %322 }
  0xde   :  { %vm342_vm6 = vcmp.eq.s32.totalorder %v1504_v54, %v326_v39  ;;  %vm341_vm7 = vcmp.eq.s32.totalorder %v1504_v54, %v323_v40  ;;  %1234 = vmatmul.mubr.msk.f32.gmra.mrb[14].mxu0 %vm572_vm4, %v262_v38 }
  0xdf   :  { %v1114_v41 = vsel %vm342_vm6, 1.0, %v1318_v59  ;;  %v1113_v42 = vsel %vm341_vm7, 1.0, %v1318_v59 }
  0xe0   :  { %1205 = vmatprep.mubr.msk.f32.mxu1 %vm378_vm5, %v1113_v42 }
  0xe1   :  { %1206 = vmatmul.mubr.msk.f32.gmra.mrb[14].mxu1 %vm378_vm5, %v1114_v41  ;;  %vm951_vm5 = vcmask 130112  }
 0x15e   :  { %v1214_v43 = vpop.f32.mrb[0].mxu0 }
 0x15f   :  { %v687_v44 = vpop.f32.mrb[1].mxu0 }
 0x160   :  { %v1186_v45 = vpop.f32.mrb[0].mxu1 }
 0x161   :  { %v693_v46 = vadd.f32 %v1214_v43, %v1186_v45  ;;  %v493_v47 = vpop.f32.mrb[1].mxu1 }
 0x162   :  { %v688_v48 = vadd.f32 %v687_v44, %v493_v47 }
 0x163   :  { %v767_v49 = vmul.f32 %v693_v46, %v693_v46 }
 0x164   :  { %v766_v50 = vmul.f32 %v688_v48, %v688_v48 }
 0x165   :  { %784 = vadd.xlane.f32.xlu1 %v767_v49 }
 0x166   :  { %782 = vadd.xlane.f32.xlu0 %v766_v50 }
 0x169   :  { %v1217_v51 = vpop.f32.mrb[2].mxu0 }
 0x16a   :  { %v697_v52 = vpop.f32.mrb[3].mxu0 }
 0x16c   :  { %v1189_v55 = vpop.f32.mrb[2].mxu1 }
 0x16d   :  { %v703_v56 = vadd.f32 %v1217_v51, %v1189_v55  ;;  %v503_v57 = vpop.f32.mrb[3].mxu1  ;;  %v1648_v55 = vshrl.u32 %v21_v53, 7 }
 0x16e   :  { %v698_v59 = vadd.f32 %v697_v52, %v503_v57 }
 0x16f   :  { %v769_v58 = vmul.f32 %v703_v56, %v703_v56  ;;  %v946_v56 = vadd.s32 4294967288, %v1504_v54 }
 0x170   :  { %v768_v60 = vmul.f32 %v698_v59, %v698_v59  ;;  %v1652_v59 = vadd.s32 4294967272, %v1504_v54 }
 0x171   :  { %788 = vadd.xlane.f32.xlu0 %v769_v58  ;;  %v1655_v58 = vadd.s32 4294967280, %v1504_v54 }
 0x175   :  { %v1220_v61 = vpop.f32.mrb[4].mxu0  ;;  %786 = vadd.xlane.f32.xlu0 %v768_v60  ;;  %v1658_v60 = vadd.s32 4294967256, %v1504_v54 }
 0x176   :  { %v707_v62 = vpop.f32.mrb[5].mxu0 }
 0x178   :  { %v1192_v63 = vpop.f32.mrb[4].mxu1 }
 0x179   :  { %v713_v0 = vadd.f32 %v1220_v61, %v1192_v63  ;;  %v513_v1 = vpop.f32.mrb[5].mxu1  ;;  %v1662_v61 = vadd.s32 4294967264, %v1504_v54  ;;  %v949_v63 = vsub.s32 %v946_v56, %v1648_v55 }
 0x17a   :  { %v708_v2 = vadd.f32 %v707_v62, %v513_v1 }
 0x17b   :  { %v771_v3 = vmul.f32 %v713_v0, %v713_v0 }
 0x17c   :  { %v770_v4 = vmul.f32 %v708_v2, %v708_v2  ;;  %v944_v2 = vsub.s32 %v1504_v54, %v1648_v55 }
 0x17d   :  { %792 = vadd.xlane.f32.xlu0 %v771_v3  ;;  %v963_v3 = vsub.s32 %v1652_v59, %v1648_v55 }
 0x17e   :  { %790 = vadd.xlane.f32.xlu1 %v770_v4  ;;  %v956_v4 = vsub.s32 %v1655_v58, %v1648_v55 }
 0x181   :  { %v1223_v5 = vpop.f32.mrb[6].mxu0 }
 0x182   :  { %v717_v6 = vpop.f32.mrb[7].mxu0 }
 0x184   :  { %v1195_v7 = vpop.f32.mrb[6].mxu1 }
 0x185   :  { %v723_v8 = vadd.f32 %v1223_v5, %v1195_v7  ;;  %v523_v9 = vpop.f32.mrb[7].mxu1  ;;  %v977_v5 = vsub.s32 %v1658_v60, %v1648_v55 }
 0x186   :  { %v718_v10 = vadd.f32 %v717_v6, %v523_v9  ;;  %v1682_v9 = vadd.s32 4294967240, %v1504_v54 }
 0x187   :  { %v773_v11 = vmul.f32 %v723_v8, %v723_v8  ;;  %v970_v8 = vsub.s32 %v1662_v61, %v1648_v55 }
 0x188   :  { %v772_v12 = vmul.f32 %v718_v10, %v718_v10 }
 0x189   :  { %796 = vadd.xlane.f32.xlu0 %v773_v11 }
 0x18a   :  { %794 = vadd.xlane.f32.xlu1 %v772_v12  ;;  %v1685_v12 = vadd.s32 4294967248, %v1504_v54 }
 0x18d   :  { %v1226_v13 = vpop.f32.mrb[8].mxu0 }
 0x18e   :  { %v727_v14 = vpop.f32.mrb[9].mxu0 }
 0x190   :  { %v1198_v15 = vpop.f32.mrb[8].mxu1 }
 0x191   :  { %v733_v16 = vadd.f32 %v1226_v13, %v1198_v15  ;;  %v533_v17 = vpop.f32.mrb[9].mxu1 }
 0x192   :  { %v728_v18 = vadd.f32 %v727_v14, %v533_v17 }
 0x193   :  { %v775_v19 = vmul.f32 %v733_v16, %v733_v16  ;;  %v1690_v16 = vadd.s32 4294967224, %v1504_v54 }
 0x194   :  { %v774_v20 = vmul.f32 %v728_v18, %v728_v18 }
 0x195   :  { %800 = vadd.xlane.f32.xlu0 %v775_v19 }
 0x196   :  { %798 = vadd.xlane.f32.xlu1 %v774_v20  ;;  %v1698_v20 = vadd.s32 4294967232, %v1504_v54 }
 0x199   :  { %v1229_v21 = vpop.f32.mrb[10].mxu0 }
 0x19a   :  { %v737_v22 = vpop.f32.mrb[11].mxu0 }
 0x19c   :  { %v1201_v23 = vpop.f32.mrb[10].mxu1 }
 0x19d   :  { %v743_v24 = vadd.f32 %v1229_v21, %v1201_v23  ;;  %v543_v25 = vpop.f32.mrb[11].mxu1 }
 0x19e   :  { %v738_v26 = vadd.f32 %v737_v22, %v543_v25 }
 0x19f   :  { %v777_v27 = vmul.f32 %v743_v24, %v743_v24 }
 0x1a0   :  { %v776_v28 = vmul.f32 %v738_v26, %v738_v26 }
 0x1a1   :  { %804 = vadd.xlane.f32.xlu0 %v777_v27 }
 0x1a2   :  { %802 = vadd.xlane.f32.xlu1 %v776_v28 }
 0x1a5   :  { %v1232_v29 = vpop.f32.mrb[12].mxu0 }
 0x1a6   :  { %v747_v30 = vpop.f32.mrb[13].mxu0 }
 0x1a8   :  { %v1204_v31 = vpop.f32.mrb[12].mxu1 }
 0x1a9   :  { %v753_v32 = vadd.f32 %v1232_v29, %v1204_v31  ;;  %v553_v33 = vpop.f32.mrb[13].mxu1  ;;  %v991_v29 = vsub.s32 %v1682_v9, %v1648_v55  ;;  %v1030_v9 = vadd.s32 4294967192, %v1504_v54 }
 0x1aa   :  { %v748_v34 = vadd.f32 %v747_v30, %v553_v33  ;;  %v984_v30 = vsub.s32 %v1685_v12, %v1648_v55 }
 0x1ab   :  { %v779_v35 = vmul.f32 %v753_v32, %v753_v32  ;;  %v1005_v32 = vsub.s32 %v1690_v16, %v1648_v55 }
 0x1ac   :  { %v778_v36 = vmul.f32 %v748_v34, %v748_v34 }
 0x1ad   :  { %808 = vadd.xlane.f32.xlu0 %v779_v35 }
 0x1ae   :  { %806 = vadd.xlane.f32.xlu1 %v778_v36 }
 0x1b1   :  { %v1235_v37 = vpop.f32.mrb[14].mxu0 }
 0x1b2   :  { %v757_v38 = vpop.f32.mrb[15].mxu0 }
 0x1b4   :  { %v1207_v39 = vpop.f32.mrb[14].mxu1 }
 0x1b5   :  { %v763_v40 = vadd.f32 %v1235_v37, %v1207_v39  ;;  %v563_v41 = vpop.f32.mrb[15].mxu1 }
 0x1b6   :  { %v758_v42 = vadd.f32 %v757_v38, %v563_v41  ;;  %v998_v41 = vsub.s32 %v1698_v20, %v1648_v55 }
 0x1b7   :  { %v781_v43 = vmul.f32 %v763_v40, %v763_v40 }
 0x1b8   :  { %v780_v44 = vmul.f32 %v758_v42, %v758_v42 }
 0x1b9   :  { %812 = vadd.xlane.f32.xlu0 %v781_v43 }
 0x1ba   :  { %810 = vadd.xlane.f32.xlu1 %v780_v44 }
 0x1f2   :  { %v785_v47 = vpop.xlane.xlu1 %784 }
 0x1f3   :  { %v783_v45 = vpop.xlane.xlu0 %782  ;;  %1261 = vrsqrt.f32 %v785_v47  ;;  %vm823_vm4 = vcmp.eq.f32.partialorder %v785_v47, inf  ;;  %v826_v14 = vand.u32 2147483648, %v785_v47  ;;  %vm825_vm9 = vcmp.eq.f32.partialorder %v785_v47, 0.0 }
 0x1f4   :  { %1263 = vrsqrt.f32 %v783_v45  ;;  %vm816_vm8 = vcmp.eq.f32.partialorder %v783_v45, inf  ;;  %v819_v18 = vand.u32 2147483648, %v783_v45  ;;  %vm818_vm12 = vcmp.eq.f32.partialorder %v783_v45, 0.0 }
 0x1fd   :  { %v1262_v52 = vpop.eup %1261 }
 0x1fe   :  { %v1634_v46 = vpop.xlane.xlu0 %788  ;;  %v1264_v57 = vpop.eup %1263  ;;  %v822_v62 = vmul.f32 %v1262_v52, %v785_v47 }
 0x1ff   :  { %v815_v0 = vmul.f32 %v1264_v57, %v783_v45  ;;  %vm837_vm15 = vcmp.eq.f32.partialorder %v1634_v46, inf  ;;  %v840_v42 = vand.u32 2147483648, %v1634_v46  ;;  %vm839_vm6 = vcmp.eq.f32.partialorder %v1634_v46, 0.0 }
 0x200   :  { %v824_v11 = vsel %vm823_vm4, %v785_v47, %v822_v62  ;;  %v1730_v47 = vadd.s32 4294967208, %v1504_v54  ;;  %vm986_vm4 = vcmask 458112  }
 0x201   :  { %v817_v15 = vsel %vm816_vm8, %v783_v45, %v815_v0  ;;  %v827_v21 = vsel %vm825_vm9, %v826_v14, %v824_v11 }
 0x202   :  { %v1636_v48 = vpop.xlane.xlu0 %786  ;;  %v820_v25 = vsel %vm818_vm12, %v819_v18, %v817_v15  ;;  %v950_v34 = vrot.slane %v827_v21, %v949_v63  ;;  %v1019_v61 = vsub.s32 %v1730_v47, %v1648_v55 }
 0x203   :  { %1265 = vrsqrt.f32 %v1636_v48  ;;  %vm830_vm11 = vcmp.eq.f32.partialorder %v1636_v48, inf  ;;  %v833_v27 = vand.u32 2147483648, %v1636_v48  ;;  %vm832_vm13 = vcmp.eq.f32.partialorder %v1636_v48, 0.0 }
 0x204   :  { %v945_v35 = vrot.slane %v820_v25, %v944_v2 }
 0x206   :  { %v952_v52 = vsel %vm951_vm5, %v950_v34, %v945_v35 }
 0x20a   :  { %v1643_v50 = vpop.xlane.xlu0 %792 }
 0x20b   :  { %v1639_v49 = vpop.xlane.xlu1 %790  ;;  %vm851_vm7 = vcmp.eq.f32.partialorder %v1643_v50, inf  ;;  %vm853_vm9 = vcmp.eq.f32.partialorder %v1643_v50, 0.0 }
 0x20c   :  { %1267 = vrsqrt.f32 %v1639_v49  ;;  %vm844_vm1 = vcmp.eq.f32.partialorder %v1639_v49, inf  ;;  %v847_v39 = vand.u32 2147483648, %v1639_v49  ;;  %vm846_vm2 = vcmp.eq.f32.partialorder %v1639_v49, 0.0 }
 0x20d   :  { %1269 = vrsqrt.f32 %v1634_v46  ;;  %v1266_v53 = vpop.eup %1265 }
 0x20e   :  { %1271 = vrsqrt.f32 %v1643_v50  ;;  %v829_v7 = vmul.f32 %v1266_v53, %v1636_v48 }
 0x210   :  { %v831_v22 = vsel %vm830_vm11, %v1636_v48, %v829_v7 }
 0x211   :  { %v834_v31 = vsel %vm832_vm13, %v833_v27, %v831_v22  ;;  %vm1000_vm13 = vcmask 589312  }
 0x212   :  { %v957_v43 = vrot.slane %v834_v31, %v956_v4 }
 0x214   :  { %v959_v62 = vsel %vm958_vm10, %v957_v43, %v952_v52  ;;  %vm993_vm10 = vcmask 523712  }
 0x216   :  { %v1676_v6 = vpop.xlane.xlu0 %796  ;;  %v1268_v10 = vpop.eup %1267 }
 0x217   :  { %v1645_v51 = vpop.xlane.xlu1 %794  ;;  %v1270_v13 = vpop.eup %1269  ;;  %v843_v23 = vmul.f32 %v1268_v10, %v1639_v49  ;;  %vm865_vm11 = vcmp.eq.f32.partialorder %v1676_v6, inf  ;;  %v868_v60 = vand.u32 2147483648, %v1676_v6 }
 0x218   :  { %1273 = vrsqrt.f32 %v1645_v51  ;;  %v1272_v24 = vpop.eup %1271  ;;  %v836_v26 = vmul.f32 %v1270_v13, %v1634_v46  ;;  %vm858_vm8 = vcmp.eq.f32.partialorder %v1645_v51, inf  ;;  %v861_v0 = vand.u32 2147483648, %v1645_v51 }
 0x219   :  { %v850_v36 = vmul.f32 %v1272_v24, %v1643_v50  ;;  %v845_v37 = vsel %vm844_vm1, %v1639_v49, %v843_v23  ;;  %vm860_vm5 = vcmp.eq.f32.partialorder %v1645_v51, 0.0 }
 0x21a   :  { %v838_v38 = vsel %vm837_vm15, %v1634_v46, %v836_v26  ;;  %v848_v45 = vsel %vm846_vm2, %v847_v39, %v845_v37  ;;  %v854_v46 = vand.u32 2147483648, %v1643_v50  ;;  %vm1007_vm15 = vcmask 654912  }
 0x21b   :  { %v841_v56 = vsel %vm839_vm6, %v840_v42, %v838_v38  ;;  %v852_v57 = vsel %vm851_vm7, %v1643_v50, %v850_v36  ;;  %v971_v63 = vrot.slane %v848_v45, %v970_v8  ;;  %v1009_v8 = vadd.s32 4294967216, %v1504_v54 }
 0x21c   :  { %v964_v50 = vrot.slane %v841_v56, %v963_v3  ;;  %v855_v7 = vsel %vm853_vm9, %v854_v46, %v852_v57 }
 0x21e   :  { %v966_v14 = vsel %vm965_vm14, %v964_v50, %v959_v62 }
 0x21f   :  { %v973_v59 = vsel %vm972_vm0, %v971_v63, %v966_v14  ;;  %vm867_vm0 = vcmp.eq.f32.partialorder %v1676_v6, 0.0 }
 0x222   :  { %v1695_v19 = vpop.xlane.xlu0 %800  ;;  %v1274_v28 = vpop.eup %1273 }
 0x223   :  { %v1666_v1 = vpop.xlane.xlu1 %798  ;;  %v857_v40 = vmul.f32 %v1274_v28, %v1645_v51  ;;  %vm879_vm2 = vcmp.eq.f32.partialorder %v1695_v19, inf  ;;  %v882_v27 = vand.u32 2147483648, %v1695_v19  ;;  %vm881_vm6 = vcmp.eq.f32.partialorder %v1695_v19, 0.0 }
 0x224   :  { %1275 = vrsqrt.f32 %v1666_v1  ;;  %vm872_vm12 = vcmp.eq.f32.partialorder %v1666_v1, inf  ;;  %v875_v23 = vand.u32 2147483648, %v1666_v1  ;;  %vm874_vm14 = vcmp.eq.f32.partialorder %v1666_v1, 0.0 }
 0x225   :  { %1277 = vrsqrt.f32 %v1676_v6  ;;  %v859_v58 = vsel %vm858_vm8, %v1645_v51, %v857_v40  ;;  %v978_v51 = vrot.slane %v855_v7, %v977_v5  ;;  %v1012_v5 = vsub.s32 %v1009_v8, %v1648_v55 }
 0x226   :  { %v862_v13 = vsel %vm860_vm5, %v861_v0, %v859_v58  ;;  %v1044_v58 = vadd.s32 4294967176, %v1504_v54  ;;  %v1037_v0 = vadd.s32 4294967184, %v1504_v54 }
 0x227   :  { %v985_v21 = vrot.slane %v862_v13, %v984_v30  ;;  %v980_v25 = vsel %vm979_vm3, %v978_v51, %v973_v59 }
 0x228   :  { %v1040_v47 = vsub.s32 %v1037_v0, %v1648_v55 }
 0x22e   :  { %v1715_v33 = vpop.xlane.xlu0 %804  ;;  %v1276_v44 = vpop.eup %1275 }
 0x22f   :  { %v1692_v17 = vpop.xlane.xlu1 %802  ;;  %v1278_v48 = vpop.eup %1277  ;;  %v871_v2 = vmul.f32 %v1276_v44, %v1666_v1  ;;  %vm893_vm7 = vcmp.eq.f32.partialorder %v1715_v33, inf  ;;  %vm895_vm9 = vcmp.eq.f32.partialorder %v1715_v33, 0.0 }
 0x230   :  { %1279 = vrsqrt.f32 %v1692_v17  ;;  %v864_v10 = vmul.f32 %v1278_v48, %v1676_v6  ;;  %vm886_vm1 = vcmp.eq.f32.partialorder %v1692_v17, inf  ;;  %vm888_vm3 = vcmp.eq.f32.partialorder %v1692_v17, 0.0 }
 0x231   :  { %1281 = vrsqrt.f32 %v1695_v19  ;;  %v873_v3 = vsel %vm872_vm12, %v1666_v1, %v871_v2  ;;  %v987_v1 = vsel %vm986_vm4, %v985_v21, %v980_v25  ;;  %vm1014_vm4 = vcmask 720512  }
 0x232   :  { %1283 = vrsqrt.f32 %v1715_v33  ;;  %v866_v18 = vsel %vm865_vm11, %v1676_v6, %v864_v10  ;;  %v876_v26 = vsel %vm874_vm14, %v875_v23, %v873_v3  ;;  %v889_v6 = vand.u32 2147483648, %v1692_v17 }
 0x233   :  { %v869_v12 = vsel %vm867_vm0, %v868_v60, %v866_v18  ;;  %v999_v36 = vrot.slane %v876_v26, %v998_v41  ;;  %vm1021_vm11 = vcmask 786112   ;;  %vm1028_vm12 = vcmask 851712  }
 0x234   :  { %v992_v39 = vrot.slane %v869_v12, %v991_v29  ;;  %v896_v29 = vand.u32 2147483648, %v1715_v33 }
 0x236   :  { %v994_v41 = vsel %vm993_vm10, %v992_v39, %v987_v1 }
 0x237   :  { %v1001_v45 = vsel %vm1000_vm13, %v999_v36, %v994_v41  ;;  %vm1035_vm13 = vcmask 917312  }
 0x23a   :  { %v1740_v53 = vpop.xlane.xlu0 %808  ;;  %v1280_v4 = vpop.eup %1279 }
 0x23b   :  { %v1735_v49 = vpop.xlane.xlu1 %806  ;;  %v1282_v11 = vpop.eup %1281  ;;  %v885_v15 = vmul.f32 %v1280_v4, %v1692_v17  ;;  %vm907_vm10 = vcmp.eq.f32.partialorder %v1740_v53, inf  ;;  %v910_v4 = vand.u32 2147483648, %v1740_v53  ;;  %vm909_vm14 = vcmp.eq.f32.partialorder %v1740_v53, 0.0 }
 0x23c   :  { %1285 = vrsqrt.f32 %v1735_v49  ;;  %v878_v22 = vmul.f32 %v1282_v11, %v1695_v19  ;;  %v1284_v24 = vpop.eup %1283  ;;  %vm900_vm8 = vcmp.eq.f32.partialorder %v1735_v49, inf  ;;  %v903_v56 = vand.u32 2147483648, %v1735_v49 }
 0x23d   :  { %1287 = vrsqrt.f32 %v1740_v53  ;;  %v887_v28 = vsel %vm886_vm1, %v1692_v17, %v885_v15  ;;  %v892_v34 = vmul.f32 %v1284_v24, %v1715_v33  ;;  %v1023_v17 = vadd.s32 4294967200, %v1504_v54 }
 0x23e   :  { %v880_v31 = vsel %vm879_vm2, %v1695_v19, %v878_v22  ;;  %v890_v40 = vsel %vm888_vm3, %v889_v6, %v887_v28  ;;  %vm902_vm5 = vcmp.eq.f32.partialorder %v1735_v49, 0.0  ;;  %v1047_v54 = vsub.s32 %v1044_v58, %v1648_v55 }
 0x23f   :  { %v883_v43 = vsel %vm881_vm6, %v882_v27, %v880_v31  ;;  %v894_v20 = vsel %vm893_vm7, %v1715_v33, %v892_v34  ;;  %v1013_v19 = vrot.slane %v890_v40, %v1012_v5  ;;  %v1026_v46 = vsub.s32 %v1023_v17, %v1648_v55 }
 0x240   :  { %v1006_v48 = vrot.slane %v883_v43, %v1005_v32  ;;  %v897_v57 = vsel %vm895_vm9, %v896_v29, %v894_v20  ;;  %vm1042_vm3 = vcmask 982912   ;;  %vm1049_vm6 = vcmask 1048512  }
 0x241   :  { %v1020_v32 = vrot.slane %v897_v57, %v1019_v61 }
 0x242   :  { %v1008_v63 = vsel %vm1007_vm15, %v1006_v48, %v1001_v45 }
 0x243   :  { %v1015_v16 = vsel %vm1014_vm4, %v1013_v19, %v1008_v63 }
 0x244   :  { %v1022_v11 = vsel %vm1021_vm11, %v1020_v32, %v1015_v16 }
 0x246   :  { %v1286_v30 = vpop.eup %1285  ;;  %v1786_v35 = vpop.xlane.xlu0 %812 }
 0x247   :  { %v899_v37 = vmul.f32 %v1286_v30, %v1735_v49  ;;  %1289 = vrsqrt.f32 %v1786_v35  ;;  %v811_v38 = vpop.xlane.xlu1 %810  ;;  %v1288_v42 = vpop.eup %1287  ;;  %vm921_vm15 = vcmp.eq.f32.partialorder %v1786_v35, inf  ;;  %v924_v13 = vand.u32 2147483648, %v1786_v35 }
 0x248   :  { %1291 = vrsqrt.f32 %v811_v38  ;;  %v906_v52 = vmul.f32 %v1288_v42, %v1740_v53  ;;  %vm923_vm0 = vcmp.eq.f32.partialorder %v1786_v35, 0.0  ;;  %vm914_vm1 = vcmp.eq.f32.partialorder %v811_v38, inf }
 0x249   :  { %v901_v44 = vsel %vm900_vm8, %v1735_v49, %v899_v37  ;;  %v1033_v49 = vsub.s32 %v1030_v9, %v1648_v55  ;;  %v917_v51 = vand.u32 2147483648, %v811_v38  ;;  %vm916_vm2 = vcmp.eq.f32.partialorder %v811_v38, 0.0 }
 0x24a   :  { %v904_v62 = vsel %vm902_vm5, %v903_v56, %v901_v44  ;;  %v908_v33 = vsel %vm907_vm10, %v1740_v53, %v906_v52 }
 0x24b   :  { %v1027_v50 = vrot.slane %v904_v62, %v1026_v46  ;;  %v911_v8 = vsel %vm909_vm14, %v910_v4, %v908_v33 }
 0x24c   :  { %v1034_v18 = vrot.slane %v911_v8, %v1033_v49 }
 0x24d   :  { %v1029_v3 = vsel %vm1028_vm12, %v1027_v50, %v1022_v11 }
 0x24e   :  { %v1036_v21 = vsel %vm1035_vm13, %v1034_v18, %v1029_v3 }
 0x251   :  { %v1290_v2 = vpop.eup %1289 }
 0x252   :  { %v1292_v7 = vpop.eup %1291  ;;  %v920_v10 = vmul.f32 %v1290_v2, %v1786_v35 }
 0x253   :  { %v913_v61 = vmul.f32 %v1292_v7, %v811_v38 }
 0x254   :  { %v922_v14 = vsel %vm921_vm15, %v1786_v35, %v920_v10 }
 0x255   :  { %v915_v59 = vsel %vm914_vm1, %v811_v38, %v913_v61  ;;  %v925_v53 = vsel %vm923_vm0, %v924_v13, %v922_v14 }
 0x256   :  { %v918_v15 = vsel %vm916_vm2, %v917_v51, %v915_v59  ;;  %v1048_v22 = vrot.slane %v925_v53, %v1047_v54 }
 0x257   :  { %v1041_v55 = vrot.slane %v918_v15, %v1040_v47 }
 0x259   :  { %v1043_v23 = vsel %vm1042_vm3, %v1041_v55, %v1036_v21 }
 0x25a   :  { %v1050_v24 = vsel %vm1049_vm6, %v1048_v22, %v1043_v23 }
 0x25b   :  { %1052 = vst [vmem:[#allocation2] sm:$0x1] %v1050_v24 }
 0x25c   :  { %1304 = shalt.err (!%p1301_p4)
}
 0x25d   :  { %s1305_s17 = scalar_lea.hbm %s1853_s5, 16 }
 0x25e   :  { %p1306_p5 = scmp.ne.s32.totalorder %s1853_s5, %s1305_s17  ;;  %p1309_p6 = scmp.lt.u32.totalorder %s1305_s17, %s1853_s5 }
 0x260   :  { %p1311_p7 = pnand %p1309_p6, %p1306_p5 }
 0x262   :  { %1314 = shalt.err (!%p1311_p7)
}
 0x263   :  { %1062 = dma.vmem_to_hbm [thread:$0]  %s1060_s1, 16, %s1853_s5, [#allocation3]  }
 0x264   :  { %1315 = dma.done.wait [#allocation3], 16  }
 0x265   :  { %1316 = vsyncadd [#allocation3], 4294967280 }
 0x266   :  { %1066 = vsyncpa [#allocation3], 1 }

</bundles_post_ra>
